<compile_context>
chip_gen: v6e
topology: v6e:2x2x1
jax: 0.10.0
libtpu: 0.0.40
codegen_flags: <defaults>
</compile_context>

<pallas_src>
import functools

import jax
import jax.numpy as jnp
from jax import lax
from jax.experimental import pallas as pl
from jax.experimental.pallas import tpu as pltpu

LANES = 128
SUBLANES = 8
MAX_ROW_TILE = 4096  # 4096 x 128 f32 = 2 MiB per input tile


def _loss_kernel(x_ref, t_ref, o_ref, acc_ref, *, rows, row_tile, tiles_per_shard):
    s = pl.program_id(0)  # shard axis ("parallel", megacore)
    i = pl.program_id(1)  # reduction axis ("arbitrary")

    @pl.when(i == 0)
    def _():
        acc_ref[...] = jnp.zeros_like(acc_ref)

    # Cast on the VPU inside the kernel (free under the vld-bound loop).
    diff = x_ref[...].astype(jnp.float32) - t_ref[...].astype(jnp.float32)

    # Global tile index (unclamped, so overshoot shards see rows_remaining<=0).
    tile_idx = s * tiles_per_shard + i
    rows_remaining = rows - tile_idx * row_tile

    n_fold = row_tile // SUBLANES

    # Steady state: full tile, no mask work at all.
    @pl.when(rows_remaining >= row_tile)
    def _():
        acc_ref[...] += jnp.sum(diff.reshape(n_fold, SUBLANES, LANES), axis=0)

    # Tail / overshoot tile only: row-wise (row_tile, 1) iota mask (broadcast
    # by the select), zeroing rows past the true row count.  For megacore
    # overshoot tiles rows_remaining <= 0 and the whole tile contributes 0.
    @pl.when(rows_remaining < row_tile)
    def _():
        row_ids = lax.broadcasted_iota(jnp.int32, (row_tile, 1), 0)
        masked = jnp.where(row_ids < rows_remaining, diff, 0.0)
        acc_ref[...] += jnp.sum(masked.reshape(n_fold, SUBLANES, LANES), axis=0)

    # Single expensive cross-lane/cross-sublane reduce at the end of the shard.
    @pl.when(i == pl.num_programs(1) - 1)
    def _():
        o_ref[...] = jnp.sum(acc_ref[...], keepdims=True)


def loss(input_arr, target_arr):
    """mean(input.reshape(-1) - target.reshape(-1)), computed in a Pallas kernel."""
    assert input_arr.shape == target_arr.shape
    x = input_arr.reshape(-1)
    t = target_arr.reshape(-1)
    n = x.shape[0]

    # 128-aligned bulk goes through the kernel; the (< 128 element) remainder
    # is handled in plain JAX below -- no O(n) concatenate/pad anywhere.
    n_bulk = (n // LANES) * LANES
    total = jnp.float32(0.0)

    if n_bulk:
        rows = n_bulk // LANES
        x2 = x[:n_bulk].reshape(rows, LANES)
        t2 = t[:n_bulk].reshape(rows, LANES)

        # Row tile: as large as possible (sublane-aligned) up to MAX_ROW_TILE.
        # A block taller than the array is fine (single partial block + mask).
        row_tile = min(MAX_ROW_TILE, ((rows + SUBLANES - 1) // SUBLANES) * SUBLANES)
        n_tiles = pl.cdiv(rows, row_tile)

        # Always engage both v7x TensorCores when there are >= 2 tiles; odd
        # tile counts are covered by clamping the index_map and masking the
        # overshoot tile to zero inside the kernel.  Single shard otherwise
        # (also the effective v5e/v6e case).
        num_shards = 2 if n_tiles >= 2 else 1
        tiles_per_shard = pl.cdiv(n_tiles, num_shards)

        def in_index_map(s, i):
            return (jnp.minimum(s * tiles_per_shard + i, n_tiles - 1), 0)

        kernel = functools.partial(
            _loss_kernel,
            rows=rows,
            row_tile=row_tile,
            tiles_per_shard=tiles_per_shard,
        )

        partials = pl.pallas_call(
            kernel,
            out_shape=jax.ShapeDtypeStruct((num_shards, 1), jnp.float32),
            grid_spec=pltpu.PrefetchScalarGridSpec(
                num_scalar_prefetch=0,
                grid=(num_shards, tiles_per_shard),
                in_specs=[
                    pl.BlockSpec((row_tile, LANES), in_index_map),
                    pl.BlockSpec((row_tile, LANES), in_index_map),
                ],
                out_specs=pl.BlockSpec((1, 1), lambda s, i: (s, 0)),
                scratch_shapes=[pltpu.VMEM((SUBLANES, LANES), jnp.float32)],
            ),
            compiler_params=pltpu.CompilerParams(
                dimension_semantics=("parallel", "arbitrary"),
                vmem_limit_bytes=32 * 1024 * 1024,
            ),
        )(x2, t2)
        total = total + jnp.sum(partials)

    if n_bulk != n:
        # Sub-128-element remainder: trivial plain-JAX sum (no HBM copy of the
        # full inputs, unlike the previous concatenate-based padding).
        x_tail = x[n_bulk:].astype(jnp.float32)
        t_tail = t[n_bulk:].astype(jnp.float32)
        total = total + jnp.sum(x_tail - t_tail)

    return total / jnp.float32(n)


if __name__ == "__main__":
    key = jax.random.PRNGKey(0)
    k1, k2 = jax.random.split(key)
    # Small NCHW shapes consistent with the PyTorch module's forward
    # (it flattens everything, so any shapes work).
    x = jax.random.normal(k1, (2, 4, 16, 16), dtype=jnp.float32)
    t = jax.random.normal(k2, (2, 4, 16, 16), dtype=jnp.float32)

    result = loss(x, t)
    jax.block_until_ready(result)

    # Reference check in plain JAX.
    ref = jnp.mean(x.reshape(-1) - t.reshape(-1))
    assert jnp.allclose(result, ref, atol=1e-5, rtol=1e-5), (result, ref)

    print("KERNEL_OK")
</pallas_src>

<mosaic_0001>
module attributes {stable_mosaic.version = 11 : i64} {
  func.func @_loss_kernel(%arg0: i32, %arg1: i32, %arg2: memref<16x128xf32, #tpu.memory_space<vmem>>, %arg3: memref<16x128xf32, #tpu.memory_space<vmem>>, %arg4: memref<1x1xf32, #tpu.memory_space<vmem>>, %arg5: memref<8x128xf32, #tpu.memory_space<vmem>>) attributes {dimension_semantics = [#tpu.dimension_semantics<parallel>, #tpu.dimension_semantics<arbitrary>], iteration_bounds = array<i64: 1, 1>, scalar_prefetch = 0 : i64, scratch_operands = 1 : i64, tpu.core_type = #tpu.core_type<tc>, window_params = [{transform_indices = @transform_0, window_bounds = array<i64: 16, 128>}, {transform_indices = @transform_1, window_bounds = array<i64: 16, 128>}, {transform_indices = @transform_2, window_bounds = array<i64: 1, 1>}]} {
    %c0_i32 = arith.constant 0 : i32
    %0 = arith.cmpi eq, %arg1, %c0_i32 : i32
    %1 = arith.extui %0 : i1 to i32
    %c0_i32_0 = arith.constant 0 : i32
    %2 = arith.cmpi ne, %1, %c0_i32_0 : i32
    scf.if %2 {
      %cst = arith.constant 0.000000e+00 : f32
      %19 = vector.broadcast %cst : f32 to vector<8x128xf32>
      %c0_11 = arith.constant 0 : index
      %c0_12 = arith.constant 0 : index
      %20 = vector.load %arg5[%c0_11, %c0_12] : memref<8x128xf32, #tpu.memory_space<vmem>>, vector<8x128xf32>
      tpu.vector_store %arg5[%c0_11, %c0_12], %19 {strides = array<i32>} : memref<8x128xf32, #tpu.memory_space<vmem>>, vector<8x128xf32>,
    } else {
    }
    %c0 = arith.constant 0 : index
    %c0_1 = arith.constant 0 : index
    %3 = vector.load %arg2[%c0, %c0_1] : memref<16x128xf32, #tpu.memory_space<vmem>>, vector<16x128xf32>
    %c0_2 = arith.constant 0 : index
    %c0_3 = arith.constant 0 : index
    %4 = vector.load %arg3[%c0_2, %c0_3] : memref<16x128xf32, #tpu.memory_space<vmem>>, vector<16x128xf32>
    %5 = arith.subf %3, %4 : vector<16x128xf32>
    %c1_i32 = arith.constant 1 : i32
    %6 = arith.muli %arg0, %c1_i32 : i32
    %7 = arith.addi %6, %arg1 : i32
    %c16_i32 = arith.constant 16 : i32
    %8 = arith.muli %7, %c16_i32 : i32
    %c16_i32_4 = arith.constant 16 : i32
    %9 = arith.subi %c16_i32_4, %8 : i32
    %c16_i32_5 = arith.constant 16 : i32
    %10 = arith.cmpi sge, %9, %c16_i32_5 : i32
    %11 = arith.extui %10 : i1 to i32
    %c0_i32_6 = arith.constant 0 : i32
    %12 = arith.cmpi ne, %11, %c0_i32_6 : i32
    scf.if %12 {
      %c0_11 = arith.constant 0 : index
      %c0_12 = arith.constant 0 : index
      %19 = vector.load %arg5[%c0_11, %c0_12] : memref<8x128xf32, #tpu.memory_space<vmem>>, vector<8x128xf32>
      %20 = vector.shape_cast %5 : vector<16x128xf32> to vector<2x8x128xf32>
      %cst = arith.constant dense<0.000000e+00> : vector<8x128xf32>
      %21 = vector.multi_reduction <add>, %20, %cst [0] : vector<2x8x128xf32> to vector<8x128xf32>
      %22 = arith.addf %19, %21 : vector<8x128xf32>
      %c0_13 = arith.constant 0 : index
      %c0_14 = arith.constant 0 : index
      %23 = vector.load %arg5[%c0_13, %c0_14] : memref<8x128xf32, #tpu.memory_space<vmem>>, vector<8x128xf32>
      tpu.vector_store %arg5[%c0_13, %c0_14], %22 {strides = array<i32>} : memref<8x128xf32, #tpu.memory_space<vmem>>, vector<8x128xf32>,
    } else {
    }
    %c16_i32_7 = arith.constant 16 : i32
    %13 = arith.cmpi slt, %9, %c16_i32_7 : i32
    %14 = arith.extui %13 : i1 to i32
    %c0_i32_8 = arith.constant 0 : i32
    %15 = arith.cmpi ne, %14, %c0_i32_8 : i32
    scf.if %15 {
      %19 = tpu.iota {dimensions = array<i32: 0>} : vector<16x1xi32>
      %20 = vector.broadcast %9 : i32 to vector<16x1xi32>
      %21 = arith.cmpi slt, %19, %20 : vector<16x1xi32>
      %cst = arith.constant 0.000000e+00 : f32
      %22 = vector.shape_cast %21 : vector<16x1xi1> to vector<16x1xi1>
      %23 = vector.broadcast %22 : vector<16x1xi1> to vector<16x128xi1>
      %24 = vector.broadcast %cst : f32 to vector<16x128xf32>
      %25 = arith.select %23, %5, %24 : vector<16x128xi1>, vector<16x128xf32>
      %c0_11 = arith.constant 0 : index
      %c0_12 = arith.constant 0 : index
      %26 = vector.load %arg5[%c0_11, %c0_12] : memref<8x128xf32, #tpu.memory_space<vmem>>, vector<8x128xf32>
      %27 = vector.shape_cast %25 : vector<16x128xf32> to vector<2x8x128xf32>
      %cst_13 = arith.constant dense<0.000000e+00> : vector<8x128xf32>
      %28 = vector.multi_reduction <add>, %27, %cst_13 [0] : vector<2x8x128xf32> to vector<8x128xf32>
      %29 = arith.addf %26, %28 : vector<8x128xf32>
      %c0_14 = arith.constant 0 : index
      %c0_15 = arith.constant 0 : index
      %30 = vector.load %arg5[%c0_14, %c0_15] : memref<8x128xf32, #tpu.memory_space<vmem>>, vector<8x128xf32>
      tpu.vector_store %arg5[%c0_14, %c0_15], %29 {strides = array<i32>} : memref<8x128xf32, #tpu.memory_space<vmem>>, vector<8x128xf32>,
    } else {
    }
    %c0_i32_9 = arith.constant 0 : i32
    %16 = arith.cmpi eq, %arg1, %c0_i32_9 : i32
    %17 = arith.extui %16 : i1 to i32
    %c0_i32_10 = arith.constant 0 : i32
    %18 = arith.cmpi ne, %17, %c0_i32_10 : i32
    scf.if %18 {
      %c0_11 = arith.constant 0 : index
      %c0_12 = arith.constant 0 : index
      %19 = vector.load %arg5[%c0_11, %c0_12] : memref<8x128xf32, #tpu.memory_space<vmem>>, vector<8x128xf32>
      %20 = vector.shape_cast %19 : vector<8x128xf32> to vector<1x8x128xf32>
      %cst = arith.constant dense<0.000000e+00> : vector<1xf32>
      %21 = vector.multi_reduction <add>, %20, %cst [1, 2] : vector<1x8x128xf32> to vector<1xf32>
      %22 = vector.shape_cast %21 : vector<1xf32> to vector<1x1x1xf32>
      %23 = vector.extract %22[0, 0, 0] : f32 from vector<1x1x1xf32>
      %24 = vector.broadcast %23 : f32 to vector<1x1xf32>
      %c0_13 = arith.constant 0 : index
      %c0_14 = arith.constant 0 : index
      %25 = vector.load %arg4[%c0_13, %c0_14] : memref<1x1xf32, #tpu.memory_space<vmem>>, vector<1x1xf32>
      tpu.vector_store %arg4[%c0_13, %c0_14], %24 {strides = array<i32>} : memref<1x1xf32, #tpu.memory_space<vmem>>, vector<1x1xf32>,
    } else {
    }
    return
  }
  func.func @transform_0(%arg0: i32, %arg1: i32) -> (i32, i32) {
    %c1_i32 = arith.constant 1 : i32
    %0 = arith.muli %arg0, %c1_i32 : i32
    %1 = arith.addi %0, %arg1 : i32
    %c0_i32 = arith.constant 0 : i32
    %2 = arith.minsi %1, %c0_i32 : i32
    %c0_i32_0 = arith.constant 0 : i32
    %c0_i32_1 = arith.constant 0 : i32
    return %2, %c0_i32_0 : i32, i32
  }
  func.func @transform_1(%arg0: i32, %arg1: i32) -> (i32, i32) {
    %c1_i32 = arith.constant 1 : i32
    %0 = arith.muli %arg0, %c1_i32 : i32
    %1 = arith.addi %0, %arg1 : i32
    %c0_i32 = arith.constant 0 : i32
    %2 = arith.minsi %1, %c0_i32 : i32
    %c0_i32_0 = arith.constant 0 : i32
    %c0_i32_1 = arith.constant 0 : i32
    return %2, %c0_i32_0 : i32, i32
  }
  func.func @transform_2(%arg0: i32, %arg1: i32) -> (i32, i32) {
    %c0_i32 = arith.constant 0 : i32
    %c0_i32_0 = arith.constant 0 : i32
    return %arg0, %c0_i32 : i32, i32
  }
}

</mosaic_0001>

<bundles_post_ra>
// kernel: tpu_custom_call.1
= control target key start
LH: loop header
LB: loop body
LE: loop exit
PB: predicated region body
PF: predicated region fallthrough
CT: control target
= control target key end

     0   :  { %7 = vsyncpa [#allocation4], 0  ;;  %s240_s0 = inlined_call_operand.hbm [shape: f32[16,128], index: 0, kind: input, shape index: {}]   ;;  %s241_s1 = inlined_call_operand.hbm [shape: f32[16,128], index: 1, kind: input, shape index: {}]   ;;  %s242_s2 = inlined_call_operand.hbm [shape: f32[1,1], index: 2, kind: output, shape index: {}]  }
   0x1   :  { %8 = vsyncpa [#allocation7], 0 }
   0x2   :  { %9 = vsyncpa [#allocation5], 0  ;;  %s211_s9 = smov [#allocation3]  }
   0x3   :  { %s21_s10 = sshll.u32 %s211_s9, 4  ;;  %s22_s10 = int_to_ptr.vmem [resolvable:$true] %s21_s10 }
   0x4   :  { %s153_s11 = scalar_lea.vmem %s22_s10, 256  ;;  %p158_p1 = scmp.lt.s32.totalorder %s22_s10, %s22_s10 }
   0x5   :  { %p154_p0 = scmp.ne.s32.totalorder %s22_s10, %s153_s11  ;;  %p159_p2 = scmp.lt.s32.totalorder %s153_s11, %s153_s11 }
   0x7   :  { %p160_p3 = por %p159_p2, %p158_p1 }
   0x9   :  { %p161_p4 = pnand %p160_p3, %p154_p0 }
   0xb   :  { %164 = shalt.err (!%p161_p4)
}
   0xc   :  { %s212_s12 = smov 128   ;;  %s213_s13 = smov 8  }
   0xd   :  { %27 = dma.hbm_to_vmem [thread:$0]  %s240_s0, 256, %s22_s10, [#allocation4], %s212_s12, %s212_s12, %s213_s13  }
   0xe   :  { %s214_s16 = smov [#allocation6]  }
   0xf   :  { %s39_s17 = sshll.u32 %s214_s16, 4  ;;  %s40_s17 = int_to_ptr.vmem [resolvable:$true] %s39_s17 }
  0x10   :  { %s173_s18 = scalar_lea.vmem %s40_s17, 256  ;;  %p178_p6 = scmp.lt.s32.totalorder %s40_s17, %s40_s17 }
  0x11   :  { %p174_p5 = scmp.ne.s32.totalorder %s40_s17, %s173_s18  ;;  %p179_p7 = scmp.lt.s32.totalorder %s173_s18, %s173_s18 }
  0x13   :  { %p180_p8 = por %p179_p7, %p178_p6 }
  0x15   :  { %p181_p9 = pnand %p180_p8, %p174_p5 }
  0x17   :  { %184 = shalt.err (!%p181_p9)
}
  0x18   :  { %45 = dma.hbm_to_vmem [thread:$0]  %s241_s1, 256, %s40_s17, [#allocation7], %s212_s12, %s212_s12, %s213_s13  }
  0x19   :  { %205 = dma.done.wait [#allocation4], 256  }
  0x1a   :  { %206 = vsyncadd [#allocation4], 4294967040 }
  0x1b   :  { %207 = dma.done.wait [#allocation7], 256  }
  0x1c   :  { %208 = vsyncadd [#allocation7], 4294967040  ;;  %v65_v0 = vld [vmem:[#allocation3] sm:$0xff]  ;;  %v66_v1 = vld [vmem:[#allocation3 + $0x8] sm:$0xff]  ;;  %s215_s0 = smov [#allocation8]   ;;  %vm116_vm0 = vcmask 0  }
  0x1d   :  { %v67_v2 = vld [vmem:[#allocation6] sm:$0xff]  ;;  %v68_v3 = vld [vmem:[#allocation6 + $0x8] sm:$0xff]  ;;  %s124_s1 = sshll.u32 %s215_s0, 4  ;;  %s125_s1 = int_to_ptr.vmem [resolvable:$true] %s124_s1 }
  0x1e   :  { %v69_v4 = vsub.f32 %v65_v0, %v67_v2  ;;  %v70_v5 = vsub.f32 %v66_v1, %v68_v3  ;;  %s185_s22 = scalar_lea.vmem %s125_s1, 16  ;;  %s189_s23 = scalar_lea.vmem %s125_s1, 32 }
  0x1f   :  { %p186_p10 = scmp.ne.s32.totalorder %s125_s1, %s185_s22  ;;  %p190_p11 = scmp.lt.s32.totalorder %s125_s1, %s125_s1 }
  0x20   :  { %v79_v6 = vadd.f32 %v70_v5, %v69_v4  ;;  %p191_p12 = scmp.lt.s32.totalorder %s189_s23, %s185_s22 }
  0x22   :  { %106 = vadd.xlane.f32.xlu0 %v79_v6  ;;  %p192_p13 = por %p191_p12, %p190_p11 }
  0x24   :  { %p193_p0 = pnand %p192_p13, %p186_p10 }
  0xab   :  { %v107_v7 = vpop.xlane.xlu0 %106 }
  0xac   :  { %v108_v8 = vrot.slane %v107_v7, 4 }
  0xae   :  { %v109_v9 = vadd.f32 %v108_v8, %v107_v7 }
  0xb0   :  { %v110_v10 = vrot.slane %v109_v9, 2 }
  0xb2   :  { %v111_v11 = vadd.f32 %v110_v10, %v109_v9 }
  0xb4   :  { %v112_v12 = vrot.slane %v111_v11, 1 }
  0xb6   :  { %v113_v13 = vadd.f32 %v112_v12, %v111_v11 }
  0xb8   :  { %138 = vpush %v113_v13 }
  0xe9   :  { %s139_s21 = spop %138 }
  0xea   :  { %v115_v14 = vstv %s139_s21 }
  0xeb   :  { %117 = vst.msk [vmem:[#allocation8] sm:$0x1] %vm116_vm0, %v115_v14 }
  0xec   :  { %196 = shalt.err (!%p193_p0)
}
  0xed   :  { %127 = dma.vmem_to_hbm [thread:$0]  %s125_s1, 16, %s242_s2, [#allocation5]  }
  0xee   :  { %209 = dma.done.wait [#allocation5], 16  }
  0xef   :  { %210 = vsyncadd [#allocation5], 4294967280 }
  0xf0   :  { %131 = vsyncpa [#allocation4], 1 }
  0xf1   :  { %132 = vsyncpa [#allocation7], 1 }
  0xf2   :  { %133 = vsyncpa [#allocation5], 1 }

</bundles_post_ra>
